<compile_context>
chip_gen: v5e
topology: v5e:2x2
jax: 0.10.0
libtpu: 0.0.40
codegen_flags: <defaults>
</compile_context>

<pallas_src>
import functools

import jax
import jax.numpy as jnp
import numpy as np
from jax.experimental import pallas as pl
from jax.experimental.pallas import tpu as pltpu

EPS = 1e-5


def _vmem_budgets():
    """Per-generation VMEM budgets (v5e/v6e: 128 MiB physical, v7x: 64 MiB)."""
    try:
        info = pltpu.get_tpu_info()
        cap = int(getattr(info, "vmem_capacity_bytes", 64 * 1024 * 1024))
    except Exception:  # conservative fallback (assume v7x-sized VMEM)
        cap = 64 * 1024 * 1024
    # 48 MiB scoped on v7x (64 MiB phys), 64 MiB on v5e/v6e (128 MiB phys).
    vmem_limit = min(cap * 3 // 4, 64 * 1024 * 1024)
    # Streaming pass 2 keeps ~4 blocks live (2x in + 2x out double buffers) + headroom.
    block_budget = vmem_limit // 6
    # Fused path holds x + out + f32 temps resident; limit is on f32-equivalent bytes.
    fast_limit = vmem_limit // 5
    return vmem_limit, block_budget, fast_limit


def _choose_spatial_tile(hw, row_bytes, budget):
    """Spatial (lane-axis) tile for x viewed as (B, C, HW). Returns (tile, needs_mask).

    Preference:
      1. largest 128-multiple divisor of hw with tile*row_bytes <= budget
      2. hw itself when a single full-extent block fits the budget (legal full-dim block)
      3. largest 128-multiple tile within budget + cdiv grid with a masked tail
    """
    max_lanes = budget // max(row_bytes, 1)
    best = 0
    for cand in range(128, hw + 1, 128):
        if cand > max_lanes:
            break
        if hw % cand == 0:
            best = cand
    if best:
        return best, False
    if hw * row_bytes <= budget:
        return hw, False
    tile = max((max_lanes // 128) * 128, 128)
    # TODO(synk): if B*C alone exceeds the budget at 128 lanes, also tile the channel
    #             axis in the grid (not needed for this module's shapes).
    return tile, True


# ----------------------------- kernels ---------------------------------------


def _fused_kernel(denom_ref, gain_ref, bias_ref, x_ref, out_ref, *, eps):
    """Single-pass path for x resident in VMEM: stats + normalize, one HBM read of x."""
    xf = x_ref[...].astype(jnp.float32)                        # (B, C, HW)
    psum = jnp.sum(xf, axis=(0, 2))[None, :]                   # (1, C)
    psq = jnp.sum(xf * xf, axis=(0, 2))[None, :]               # (1, C)
    denom = denom_ref[...]                                     # (1, C) splat of scalar
    m = psum / denom
    var = jnp.maximum(psq / denom - m * m, 0.0)                # clamp: cancellation safety
    scale = jax.lax.rsqrt(var + eps) * gain_ref[...]           # (B, C)
    shift = m * scale - bias_ref[...]                          # (B, C)
    out_ref[...] = (xf * scale[:, :, None] - shift[:, :, None]).astype(out_ref.dtype)


def _make_reduce_kernel(tile, hw, tiles_per_par, needs_mask):
    """Per-channel sum / sum^2 over (batch, spatial), accumulated across spatial tiles.

    Grid = (n_par, tiles_per_par): the leading axis is "parallel" so both TensorCores
    (v7x megacore) stream disjoint halves of x into separate (1, 1, C) partial-sum
    blocks; the trailing axis is the "arbitrary" reduction axis with resident
    accumulators (init via pl.when at t == 0).
    """

    def kernel(x_ref, sum_ref, sq_ref):
        t = pl.program_id(1)

        @pl.when(t == 0)
        def _():
            sum_ref[...] = jnp.zeros_like(sum_ref)
            sq_ref[...] = jnp.zeros_like(sq_ref)

        xf = x_ref[...].astype(jnp.float32)                    # (B, C, tile)
        if needs_mask:
            # cdiv grid: zero out lanes past the real spatial extent of the last block.
            p = pl.program_id(0)
            base = (p * tiles_per_par + t) * tile
            lane = jax.lax.broadcasted_iota(jnp.int32, xf.shape, 2) + base
            xf = jnp.where(lane < hw, xf, 0.0)
        # TODO(synk): if bundle dumps show XLU as the binding slot, accumulate into a
        #             lane-width (C, 128) scratch and reduce lanes once at the end.
        sum_ref[...] += jnp.sum(xf, axis=(0, 2))[None, None, :]
        sq_ref[...] += jnp.sum(xf * xf, axis=(0, 2))[None, None, :]

    return kernel


def _normalize_kernel(scale_ref, shift_ref, x_ref, out_ref):
    """out = x * scale - shift; scale/shift are (B, C), broadcast across the lane axis."""
    xf = x_ref[...].astype(jnp.float32)                        # (B, C, tile)
    scale = scale_ref[...][:, :, None]                         # (B, C, 1)
    shift = shift_ref[...][:, :, None]
    out_ref[...] = (xf * scale - shift).astype(out_ref.dtype)


# ----------------------------- wrapper ----------------------------------------


def partial_linear_noise_layer(x, mask, noise, w_gain, w_bias, eps=EPS,
                               force_two_pass=False, x_block_budget_bytes=None):
    """x: (B, C, H, W) NCHW, mask: (B, 1, H, W), noise: (B, N),
    w_gain / w_bias: (C, N) PyTorch nn.Linear weight layout.
    Returns (out, mask), matching PartialLinearNoiseLayer.forward in training mode."""
    B, C, H, W = x.shape
    HW = H * W

    # Free reshape (no transpose): spatial maps to the 128-wide lane axis.
    x_l = x.reshape(B, C, HW)

    # Tiny noise projections + mask sum (a few KB of work) stay in the XLA wrapper.
    noise_f = noise.astype(jnp.float32)
    gain = 1.0 + noise_f @ w_gain.astype(jnp.float32).T        # (B, C)
    bias = noise_f @ w_bias.astype(jnp.float32).T              # (B, C)
    denom = jnp.sum(mask.astype(jnp.float32)) + eps            # scalar (1-channel mask)

    vmem_limit, block_budget, fast_limit = _vmem_budgets()
    if x_block_budget_bytes is not None:
        block_budget = int(x_block_budget_bytes)

    x_f32_bytes = B * C * HW * 4

    # -------- Fast path: x fits VMEM -> one fused kernel, x read from HBM once --------
    if (not force_two_pass) and x_f32_bytes <= fast_limit:
        denom_arr = jnp.full((1, C), denom, dtype=jnp.float32)
        out_l = pl.pallas_call(
            functools.partial(_fused_kernel, eps=eps),
            out_shape=jax.ShapeDtypeStruct((B, C, HW), x.dtype),
            compiler_params=pltpu.CompilerParams(vmem_limit_bytes=vmem_limit),
        )(denom_arr, gain, bias, x_l)
        return out_l.reshape(B, C, H, W), mask

    # -------- Streaming path: two lane-dense, auto-pipelined passes over x ------------
    tile, needs_mask = _choose_spatial_tile(HW, B * C * 4, block_budget)
    n_blocks = (HW + tile - 1) // tile
    n_par = 2 if (n_blocks >= 2 and n_blocks % 2 == 0) else 1   # megacore split (v7x)
    tpp = n_blocks // n_par

    # Pass 1: per-channel sum / sum^2, per-core partial accumulators.
    psums, psqs = pl.pallas_call(
        _make_reduce_kernel(tile, HW, tpp, needs_mask),
        out_shape=(jax.ShapeDtypeStruct((n_par, 1, C), jnp.float32),
                   jax.ShapeDtypeStruct((n_par, 1, C), jnp.float32)),
        grid_spec=pltpu.PrefetchScalarGridSpec(
            num_scalar_prefetch=0,
            grid=(n_par, tpp),
            in_specs=[pl.BlockSpec((B, C, tile),
                                   lambda p, t: (0, 0, p * tpp + t))],
            out_specs=(pl.BlockSpec((1, 1, C), lambda p, t: (p, 0, 0)),
                       pl.BlockSpec((1, 1, C), lambda p, t: (p, 0, 0))),
        ),
        compiler_params=pltpu.CompilerParams(
            dimension_semantics=("parallel", "arbitrary"),
            vmem_limit_bytes=vmem_limit),
    )(x_l)

    # TODO(synk): for medium shapes this tiny stat math could be folded into the
    #             normalize kernel's prologue to drop the XLA glue between the calls.
    psum = jnp.sum(psums, axis=(0, 1))                         # (C,)
    psq = jnp.sum(psqs, axis=(0, 1))                           # (C,)
    m = psum / denom
    var = jnp.maximum(psq / denom - m * m, 0.0)                # clamp: cancellation safety
    inv_std = jax.lax.rsqrt(var + eps)
    scale = (inv_std[None, :] * gain).astype(jnp.float32)      # (B, C)
    shift = (m[None, :] * scale - bias).astype(jnp.float32)    # (B, C)

    # Pass 2: tiled, lane-dense, megacore-parallel normalize.
    # TODO(synk): alias x_l -> out_l via input_output_aliases when the caller donates x.
    out_l = pl.pallas_call(
        _normalize_kernel,
        out_shape=jax.ShapeDtypeStruct((B, C, HW), x.dtype),
        grid_spec=pltpu.PrefetchScalarGridSpec(
            num_scalar_prefetch=0,
            grid=(n_blocks,),
            in_specs=[
                pl.BlockSpec((B, C), lambda t: (0, 0)),
                pl.BlockSpec((B, C), lambda t: (0, 0)),
                pl.BlockSpec((B, C, tile), lambda t: (0, 0, t)),
            ],
            out_specs=pl.BlockSpec((B, C, tile), lambda t: (0, 0, t)),
        ),
        compiler_params=pltpu.CompilerParams(
            dimension_semantics=("parallel",),
            vmem_limit_bytes=vmem_limit),
    )(scale, shift, x_l)

    return out_l.reshape(B, C, H, W), mask


# ----------------------------- reference & test -------------------------------


def _reference(x, mask, noise, w_gain, w_bias, eps=EPS):
    """Pure-JAX reference mirroring the PyTorch forward (training mode)."""
    gain = (1.0 + noise @ w_gain.T)[:, :, None, None]
    bias = (noise @ w_bias.T)[:, :, None, None]
    xf = x.astype(jnp.float32)
    denom = jnp.sum(mask, axis=(0, 2, 3), keepdims=True) + eps
    m = jnp.sum(xf, axis=(0, 2, 3), keepdims=True) / denom
    m2 = jnp.sum(xf * xf, axis=(0, 2, 3), keepdims=True) / denom
    var = m2 - m * m
    scale = jax.lax.rsqrt(var + eps) * gain
    shift = m * scale - bias
    return x * scale - shift


def _make_inputs(key, B, C, H, W, noise_sz):
    kx, km, kn, kg, kb = jax.random.split(key, 5)
    x = jax.random.normal(kx, (B, C, H, W), dtype=jnp.float32)
    mask = (jax.random.uniform(km, (B, 1, H, W)) > 0.3).astype(jnp.float32)
    # Deterministic stand-in for the in-forward torch.randn(B, noise_sz).
    noise = jax.random.normal(kn, (B, noise_sz), dtype=jnp.float32)
    # nn.Linear(noise_sz, output_sz, bias=False) weight shape: (output_sz, noise_sz).
    bound = 1.0 / np.sqrt(noise_sz)
    w_gain = jax.random.uniform(kg, (C, noise_sz), minval=-bound, maxval=bound,
                                dtype=jnp.float32)
    w_bias = jax.random.uniform(kb, (C, noise_sz), minval=-bound, maxval=bound,
                                dtype=jnp.float32)
    return x, mask, noise, w_gain, w_bias


if __name__ == "__main__":
    B, C, noise_sz = 2, 32, 20      # output_sz = 32 channels (module default)
    key = jax.random.PRNGKey(0)
    k1, k2 = jax.random.split(key)

    # 1) Fused single-pass fast path (x fits VMEM) at the natural small shape.
    args = _make_inputs(k1, B, C, 16, 16, noise_sz)
    fwd_fused = jax.jit(partial_linear_noise_layer)
    out, mask_out = fwd_fused(*args)
    out = jax.block_until_ready(out)
    np.testing.assert_allclose(np.asarray(out), np.asarray(_reference(*args)),
                               rtol=1e-5, atol=1e-5)
    assert mask_out.shape == args[1].shape

    # 2) Streaming two-pass path (forced tiny block budget -> multi-tile + megacore split).
    fwd_stream = jax.jit(functools.partial(partial_linear_noise_layer,
                                           force_two_pass=True,
                                           x_block_budget_bytes=32 * 1024))
    out2, _ = fwd_stream(*args)
    out2 = jax.block_until_ready(out2)
    np.testing.assert_allclose(np.asarray(out2), np.asarray(_reference(*args)),
                               rtol=1e-5, atol=1e-5)

    # 3) Streaming path with a spatial extent with no 128-multiple divisor (masked tail).
    args3 = _make_inputs(k2, B, C, 18, 18, noise_sz)
    fwd_masked = jax.jit(functools.partial(partial_linear_noise_layer,
                                           force_two_pass=True,
                                           x_block_budget_bytes=64 * 1024))
    out3, _ = fwd_masked(*args3)
    out3 = jax.block_until_ready(out3)
    np.testing.assert_allclose(np.asarray(out3), np.asarray(_reference(*args3)),
                               rtol=1e-5, atol=1e-5)

    print("KERNEL_OK")
</pallas_src>

<mosaic_0001>
module attributes {stable_mosaic.version = 11 : i64} {
  func.func @_fused_kernel(%arg0: memref<1x32xf32, #tpu.memory_space<vmem>>, %arg1: memref<2x32xf32, #tpu.memory_space<vmem>>, %arg2: memref<2x32xf32, #tpu.memory_space<vmem>>, %arg3: memref<2x32x256xf32, #tpu.memory_space<vmem>>, %arg4: memref<2x32x256xf32, #tpu.memory_space<vmem>>) attributes {dimension_semantics = [], scalar_prefetch = 0 : i64, scratch_operands = 0 : i64, tpu.core_type = #tpu.core_type<tc>} {
    %c0 = arith.constant 0 : index
    %c0_0 = arith.constant 0 : index
    %c0_1 = arith.constant 0 : index
    %0 = vector.load %arg3[%c0, %c0_0, %c0_1] : memref<2x32x256xf32, #tpu.memory_space<vmem>>, vector<2x32x256xf32>
    %cst = arith.constant dense<0.000000e+00> : vector<32xf32>
    %1 = vector.multi_reduction <add>, %0, %cst [0, 2] : vector<2x32x256xf32> to vector<32xf32>
    %2 = vector.shape_cast %1 : vector<32xf32> to vector<1x32xf32>
    %3 = arith.mulf %0, %0 : vector<2x32x256xf32>
    %cst_2 = arith.constant dense<0.000000e+00> : vector<32xf32>
    %4 = vector.multi_reduction <add>, %3, %cst_2 [0, 2] : vector<2x32x256xf32> to vector<32xf32>
    %5 = vector.shape_cast %4 : vector<32xf32> to vector<1x32xf32>
    %c0_3 = arith.constant 0 : index
    %c0_4 = arith.constant 0 : index
    %6 = vector.load %arg0[%c0_3, %c0_4] : memref<1x32xf32, #tpu.memory_space<vmem>>, vector<1x32xf32>
    %7 = arith.divf %2, %6 : vector<1x32xf32>
    %8 = arith.divf %5, %6 : vector<1x32xf32>
    %9 = arith.mulf %7, %7 : vector<1x32xf32>
    %10 = arith.subf %8, %9 : vector<1x32xf32>
    %cst_5 = arith.constant 0.000000e+00 : f32
    %11 = vector.broadcast %cst_5 : f32 to vector<1x32xf32>
    %12 = arith.maximumf %10, %11 : vector<1x32xf32>
    %cst_6 = arith.constant 9.99999974E-6 : f32
    %13 = vector.broadcast %cst_6 : f32 to vector<1x32xf32>
    %14 = arith.addf %12, %13 : vector<1x32xf32>
    %15 = math.rsqrt %14 : vector<1x32xf32>
    %c0_7 = arith.constant 0 : index
    %c0_8 = arith.constant 0 : index
    %16 = vector.load %arg1[%c0_7, %c0_8] : memref<2x32xf32, #tpu.memory_space<vmem>>, vector<2x32xf32>
    %17 = vector.broadcast %15 : vector<1x32xf32> to vector<2x32xf32>
    %18 = arith.mulf %17, %16 : vector<2x32xf32>
    %19 = vector.broadcast %7 : vector<1x32xf32> to vector<2x32xf32>
    %20 = arith.mulf %19, %18 : vector<2x32xf32>
    %c0_9 = arith.constant 0 : index
    %c0_10 = arith.constant 0 : index
    %21 = vector.load %arg2[%c0_9, %c0_10] : memref<2x32xf32, #tpu.memory_space<vmem>>, vector<2x32xf32>
    %22 = arith.subf %20, %21 : vector<2x32xf32>
    %23 = vector.shape_cast %18 : vector<2x32xf32> to vector<2x32x1xf32>
    %24 = vector.broadcast %23 : vector<2x32x1xf32> to vector<2x32x256xf32>
    %25 = arith.mulf %0, %24 : vector<2x32x256xf32>
    %26 = vector.shape_cast %22 : vector<2x32xf32> to vector<2x32x1xf32>
    %27 = vector.broadcast %26 : vector<2x32x1xf32> to vector<2x32x256xf32>
    %28 = arith.subf %25, %27 : vector<2x32x256xf32>
    %c0_11 = arith.constant 0 : index
    %c0_12 = arith.constant 0 : index
    %c0_13 = arith.constant 0 : index
    %29 = vector.load %arg4[%c0_11, %c0_12, %c0_13] : memref<2x32x256xf32, #tpu.memory_space<vmem>>, vector<2x32x256xf32>
    tpu.vector_store %arg4[%c0_11, %c0_12, %c0_13], %28 {strides = array<i32>} : memref<2x32x256xf32, #tpu.memory_space<vmem>>, vector<2x32x256xf32>,
    return
  }
}

</mosaic_0001>

<bundles_post_ra>
// kernel: partial_linear_noise_layer.1
= control target key start
LH: loop header
LB: loop body
LE: loop exit
PB: predicated region body
PF: predicated region fallthrough
CT: control target
= control target key end

     0   :  { %v92_v17 = vlaneseq  ;;  %s846_s3 = inlined_call_operand.vmem [shape: f32[2,32,256], index: 3, kind: input, shape index: {}]   ;;  %s847_s0 = inlined_call_operand.vmem [shape: f32[1,32], index: 0, kind: input, shape index: {}]   ;;  %s848_s1 = inlined_call_operand.vmem [shape: f32[2,32], index: 1, kind: input, shape index: {}]   ;;  %s849_s2 = inlined_call_operand.vmem [shape: f32[2,32], index: 2, kind: input, shape index: {}]   ;;  %s850_s4 = inlined_call_operand.vmem [shape: f32[2,32,256], index: 4, kind: output, shape index: {}]  }
   0x1   :  { %v586_v0 = vld [vmem:[%s846_s3 + $0x20] sm:$0xff]  ;;  %v591_v1 = vld [vmem:[%s846_s3 + $0x28] sm:$0xff]  ;;  %v634_v12 = vld [vmem:[%s846_s3 + $0x30] sm:$0xff] }
   0x2   :  { %v596_v2 = vld [vmem:[%s846_s3 + $0x60] sm:$0xff]  ;;  %v601_v3 = vld [vmem:[%s846_s3 + $0x68] sm:$0xff]  ;;  %v43_v4 = vadd.f32 %v591_v1, %v586_v0  ;;  %v642_v15 = vld [vmem:[%s846_s3 + $0x38] sm:$0xff]  ;;  %v59_v35 = vmul.f32 %v634_v12, %v634_v12  ;;  %v57_v40 = vmul.f32 %v586_v0, %v586_v0  ;;  %v58_v41 = vmul.f32 %v591_v1, %v591_v1 }
   0x3   :  { %v608_v5 = vld [vmem:[%s846_s3] sm:$0xff]  ;;  %v613_v6 = vld [vmem:[%s846_s3 + $0x8] sm:$0xff]  ;;  %v647_v16 = vld [vmem:[%s846_s3 + $0x70] sm:$0xff]  ;;  %v48_v21 = vadd.f32 %v642_v15, %v634_v12  ;;  %v60_v36 = vmul.f32 %v642_v15, %v642_v15  ;;  %v699_v42 = vshrl.u32 %v92_v17, 7  ;;  %v65_v51 = vmul.f32 %v596_v2, %v596_v2 }
   0x4   :  { %v618_v7 = vld [vmem:[%s846_s3 + $0x40] sm:$0xff]  ;;  %v623_v8 = vld [vmem:[%s846_s3 + $0x48] sm:$0xff]  ;;  %v33_v9 = vadd.f32 %v613_v6, %v608_v5  ;;  %v53_v10 = vmul.f32 %v608_v5, %v608_v5  ;;  %v54_v11 = vmul.f32 %v613_v6, %v613_v6  ;;  %v44_v13 = vadd.f32 %v43_v4, %v596_v2  ;;  %v657_v22 = vld [vmem:[%s846_s3 + $0x10] sm:$0xff] }
   0x5   :  { %v61_v14 = vmul.f32 %v618_v7, %v618_v7  ;;  %v62_v19 = vmul.f32 %v623_v8, %v623_v8  ;;  %v662_v23 = vld [vmem:[%s846_s3 + $0x18] sm:$0xff]  ;;  %v667_v24 = vld [vmem:[%s846_s3 + $0x50] sm:$0xff]  ;;  %v55_v27 = vmul.f32 %v657_v22, %v657_v22  ;;  %v49_v32 = vadd.f32 %v48_v21, %v647_v16  ;;  %517 = vset.pattern.permute.xlu2 %v699_v42  ;;  %v540_v60 = vld [vmem:[%s847_s0] ss:$0 sm:$0xff] }
   0x6   :  { %v34_v18 = vadd.f32 %v33_v9, %v618_v7  ;;  %v69_v20 = vadd.f32 %v54_v11, %v53_v10  ;;  %v45_v25 = vadd.f32 %v44_v13, %v601_v3  ;;  %v38_v26 = vadd.f32 %v662_v23, %v657_v22  ;;  %v683_v33 = vld [vmem:[%s846_s3 + $0x58] sm:$0xff]  ;;  %v240_v62 = vld [vmem:[%s848_s1] sm:$0x3] }
   0x7   :  { %v56_v28 = vmul.f32 %v662_v23, %v662_v23  ;;  %v63_v31 = vmul.f32 %v667_v24, %v667_v24  ;;  %v692_v38 = vld [vmem:[%s846_s3 + $0x78] sm:$0xff]  ;;  %v64_v43 = vmul.f32 %v683_v33, %v683_v33  ;;  %v67_v45 = vmul.f32 %v647_v16, %v647_v16  ;;  %v316_v9 = vld [vmem:[%s849_s2] sm:$0x3] }
   0x8   :  { %v35_v29 = vadd.f32 %v34_v18, %v623_v8  ;;  %v70_v30 = vadd.f32 %v69_v20, %v61_v14  ;;  %46 = vadd.xlane.f32.xlu1 %v45_v25  ;;  %v39_v39 = vadd.f32 %v38_v26, %v667_v24  ;;  %v50_v46 = vadd.f32 %v49_v32, %v692_v38 }
   0x9   :  { %v74_v34 = vadd.f32 %v56_v28, %v55_v27  ;;  %v84_v47 = vadd.f32 %v60_v36, %v59_v35  ;;  %v100_v48 = vadd.s32 8, %v699_v42  ;;  %v106_v49 = vadd.s32 16, %v699_v42 }
   0xa   :  { %36 = vadd.xlane.f32.xlu0 %v35_v29  ;;  %v71_v37 = vadd.f32 %v70_v30, %v62_v19  ;;  %v40_v50 = vadd.f32 %v39_v39, %v683_v33  ;;  %v79_v52 = vadd.f32 %v58_v41, %v57_v40  ;;  %v68_v54 = vmul.f32 %v692_v38, %v692_v38 }
   0xb   :  { %v75_v44 = vadd.f32 %v74_v34, %v63_v31  ;;  %518 = vset.pattern.permute.xlu0 %v100_v48  ;;  %519 = vset.pattern.permute.xlu1 %v106_v49  ;;  %v85_v55 = vadd.f32 %v84_v47, %v67_v45  ;;  %v66_v56 = vmul.f32 %v601_v3, %v601_v3  ;;  %v720_v61 = vadd.s32 24, %v699_v42 }
   0xc   :  { %72 = vadd.xlane.f32.xlu2 %v71_v37  ;;  %v80_v57 = vadd.f32 %v79_v52, %v65_v51  ;;  %v267_v63 = vperm.slane %v240_v62, 1  ;;  %v242_v4 = vperm.slane %v240_v62, 0  ;;  %v318_v10 = vperm.slane %v316_v9, 0 }
   0xd   :  { %v76_v53 = vadd.f32 %v75_v44, %v64_v43  ;;  %v86_v58 = vadd.f32 %v85_v55, %v68_v54  ;;  %v732_v11 = vperm.slane %v316_v9, 1  ;;  %v557_v45 = vmov 0  }
   0xe   :  { %v81_v59 = vadd.f32 %v80_v57, %v66_v56 }
  0x10   :  { %51 = vadd.xlane.f32.xlu1 %v50_v46 }
  0x12   :  { %41 = vadd.xlane.f32.xlu0 %v40_v50 }
  0x14   :  { %77 = vadd.xlane.f32.xlu2 %v76_v53 }
  0x18   :  { %87 = vadd.xlane.f32.xlu1 %v86_v58 }
  0x1a   :  { %82 = vadd.xlane.f32.xlu0 %v81_v59 }
  0x2c   :  { %96 = vperm.xlu2 %517, %v540_v60  }
  0x2e   :  { %102 = vperm.xlu0 %518, %v540_v60  }
  0x31   :  { %108 = vperm.xlu1 %519, %v540_v60  }
  0x34   :  { %520 = vset.pattern.permute.xlu2 %v720_v61 }
  0x36   :  { %525 = vset.pattern.permute.xlu0 %v699_v42 }
  0x39   :  { %522 = vset.pattern.permute.xlu1 %v100_v48 }
  0x3c   :  { %114 = vperm.xlu2 %520, %v540_v60  }
  0x3e   :  { %272 = vperm.xlu0 %525, %v267_v63  }
  0x41   :  { %253 = vperm.xlu1 %522, %v242_v4  }
  0x44   :  { %521 = vset.pattern.permute.xlu2 %v699_v42 }
  0x46   :  { %530 = vset.pattern.permute.xlu0 %v100_v48 }
  0x49   :  { %524 = vset.pattern.permute.xlu1 %v720_v61 }
  0x4c   :  { %247 = vperm.xlu2 %521, %v242_v4  }
  0x4e   :  { %329 = vperm.xlu0 %530, %v318_v10  }
  0x51   :  { %265 = vperm.xlu1 %524, %v242_v4  }
  0x54   :  { %523 = vset.pattern.permute.xlu2 %v106_v49 }
  0x56   :  { %535 = vset.pattern.permute.xlu0 %v106_v49 }
  0x59   :  { %527 = vset.pattern.permute.xlu1 %v106_v49 }
  0x5c   :  { %259 = vperm.xlu2 %523, %v242_v4  }
  0x5e   :  { %360 = vperm.xlu0 %535, %v732_v11  }
  0x61   :  { %284 = vperm.xlu1 %527, %v267_v63  }
  0x64   :  { %526 = vset.pattern.permute.xlu2 %v100_v48 }
  0x66   :  { %539 = vset.pattern.permute.xlu0 %v557_v45 }
  0x69   :  { %529 = vset.pattern.permute.xlu1 %v699_v42 }
  0x6c   :  { %278 = vperm.xlu2 %526, %v267_v63  }
  0x71   :  { %323 = vperm.xlu1 %529, %v318_v10  }
  0x74   :  { %528 = vset.pattern.permute.xlu2 %v720_v61 }
  0x79   :  { %532 = vset.pattern.permute.xlu1 %v720_v61 }
  0x7b   :  { %v740_v18 = vpop.xlane.xlu1 %46 }
  0x7c   :  { %290 = vperm.xlu2 %528, %v267_v63  }
  0x7d   :  { %v37_v14 = vpop.xlane.xlu0 %36 }
  0x7f   :  { %v73_v13 = vpop.xlane.xlu2 %72 }
  0x81   :  { %341 = vperm.xlu1 %532, %v318_v10  }
  0x83   :  { %v52_v21 = vpop.xlane.xlu1 %51 }
  0x84   :  { %531 = vset.pattern.permute.xlu2 %v106_v49 }
  0x85   :  { %v742_v19 = vpop.xlane.xlu0 %41 }
  0x87   :  { %v738_v17 = vpop.xlane.xlu2 %77 }
  0x89   :  { %534 = vset.pattern.permute.xlu1 %v100_v48 }
  0x8b   :  { %v88_v34 = vpop.xlane.xlu1 %87 }
  0x8c   :  { %335 = vperm.xlu2 %531, %v318_v10  }
  0x8d   :  { %v746_v26 = vpop.xlane.xlu0 %82 }
  0x8f   :  { %v97_v20 = vpop.permute.xlu2 %96 }
  0x90   :  { %541 = vrcp.f32 %v97_v20  ;;  %v131_v29 = vand.u32 2147483648, %v97_v20  ;;  %vm125_vm0 = vweird.f32 %v97_v20  ;;  %v129_v31 = vand.u32 2147483647, %v97_v20 }
  0x91   :  { %354 = vperm.xlu1 %534, %v732_v11  }
  0x92   :  { %v132_v35 = vor.u32 1.1754944e-38, %v131_v29  ;;  %vm130_vm3 = vcmp.eq.f32.partialorder %v129_v31, 8.507059e+37 }
  0x94   :  { %533 = vset.pattern.permute.xlu2 %v699_v42 }
  0x96   :  { %v542_v25 = vpop.eup %541 }
  0x97   :  { %v121_v27 = vmul.f32 %v542_v25, %v97_v20  ;;  %v115_v28 = vpop.permute.xlu2 %114  ;;  %vm126_vm1 = vweird.f32 %v542_v25 }
  0x98   :  { %543 = vrcp.f32 %v115_v28  ;;  %vm127_vm2 = vmor %vm125_vm0, %vm126_vm1  ;;  %vm170_vm4 = vweird.f32 %v115_v28  ;;  %v174_v42 = vand.u32 2147483647, %v115_v28  ;;  %v176_v43 = vand.u32 2147483648, %v115_v28 }
  0x99   :  { %v122_v30 = vsub.f32 1.0, %v121_v27  ;;  %537 = vset.pattern.permute.xlu1 %v557_v45 }
  0x9a   :  { %v177_v50 = vor.u32 1.1754944e-38, %v176_v43  ;;  %vm175_vm7 = vcmp.eq.f32.partialorder %v174_v42, 8.507059e+37 }
  0x9b   :  { %v123_v32 = vmul.f32 %v542_v25, %v122_v30 }
  0x9c   :  { %348 = vperm.xlu2 %533, %v732_v11  }
  0x9d   :  { %v124_v36 = vadd.f32 %v542_v25, %v123_v32 }
  0x9e   :  { %v544_v37 = vpop.eup %543 }
  0x9f   :  { %v128_v39 = vsel %vm127_vm2, %v542_v25, %v124_v36  ;;  %v166_v40 = vmul.f32 %v544_v37, %v115_v28  ;;  %vm171_vm5 = vweird.f32 %v544_v37 }
  0xa0   :  { %v133_v41 = vsel %vm130_vm3, %v132_v35, %v128_v39  ;;  %v103_v44 = vpop.permute.xlu0 %102  ;;  %vm172_vm6 = vmor %vm170_vm4, %vm171_vm5 }
  0xa1   :  { %v751_v46 = vmul.f32 %v133_v41, %v37_v14  ;;  %v167_v47 = vsub.f32 1.0, %v166_v40  ;;  %545 = vrcp.f32 %v103_v44  ;;  %v180_v52 = vmul.f32 %v133_v41, %v73_v13 }
  0xa2   :  { %v146_v60 = vand.u32 2147483648, %v103_v44  ;;  %vm140_vm8 = vweird.f32 %v103_v44  ;;  %v144_v4 = vand.u32 2147483647, %v103_v44 }
  0xa3   :  { %v168_v48 = vmul.f32 %v544_v37, %v167_v47  ;;  %v184_v49 = vmul.f32 %v751_v46, %v751_v46  ;;  %v109_v51 = vpop.permute.xlu1 %108 }
  0xa4   :  { %536 = vset.pattern.permute.xlu2 %v720_v61  ;;  %547 = vrcp.f32 %v109_v51  ;;  %v147_v25 = vor.u32 1.1754944e-38, %v146_v60  ;;  %vm145_vm11 = vcmp.eq.f32.partialorder %v144_v4, 8.507059e+37  ;;  %v159_v29 = vand.u32 2147483647, %v109_v51 }
  0xa5   :  { %v169_v53 = vadd.f32 %v544_v37, %v168_v48  ;;  %v188_v54 = vsub.f32 %v180_v52, %v184_v49  ;;  %v161_v30 = vand.u32 2147483648, %v109_v51  ;;  %vm155_vm13 = vweird.f32 %v109_v51 }
  0xa6   :  { %vm160_vm15 = vcmp.eq.f32.partialorder %v159_v29, 8.507059e+37 }
  0xa7   :  { %v546_v55 = vpop.eup %545  ;;  %v173_v56 = vsel %vm172_vm6, %v544_v37, %v169_v53  ;;  %v192_v62 = vmax.f32 %v188_v54, 0.0  ;;  %v162_v40 = vor.u32 1.1754944e-38, %v161_v30 }
  0xa8   :  { %v178_v57 = vsel %vm175_vm7, %v177_v50, %v173_v56  ;;  %v136_v58 = vmul.f32 %v546_v55, %v103_v44  ;;  %vm141_vm9 = vweird.f32 %v546_v55 }
  0xa9   :  { %v756_v59 = vmul.f32 %v178_v57, %v52_v21  ;;  %v196_v61 = vadd.f32 1e-05, %v192_v62  ;;  %v183_v10 = vmul.f32 %v178_v57, %v88_v34  ;;  %vm142_vm10 = vmor %vm140_vm8, %vm141_vm9  ;;  %v248_v57 = vpop.permute.xlu2 %247 }
  0xaa   :  { %v137_v63 = vsub.f32 1.0, %v136_v58  ;;  %v548_v9 = vpop.eup %547 }
  0xab   :  { %v187_v13 = vmul.f32 %v756_v59, %v756_v59  ;;  %v151_v20 = vmul.f32 %v548_v9, %v109_v51  ;;  %549 = vrsqrt.f32 %v196_v61  ;;  %vm156_vm12 = vweird.f32 %v548_v9 }
  0xac   :  { %v138_v14 = vmul.f32 %v546_v55, %v137_v63  ;;  %366 = vperm.xlu2 %536, %v732_v11   ;;  %vm157_vm14 = vmor %vm155_vm13, %vm156_vm12  ;;  %vm206_vm1 = vweird.f32 %v196_v61 }
  0xad   :  { %v191_v21 = vsub.f32 %v183_v10, %v187_v13  ;;  %v152_v28 = vsub.f32 1.0, %v151_v20 }
  0xae   :  { %v139_v27 = vadd.f32 %v546_v55, %v138_v14 }
  0xaf   :  { %v195_v31 = vmax.f32 %v191_v21, 0.0  ;;  %v153_v35 = vmul.f32 %v548_v9, %v152_v28 }
  0xb0   :  { %v143_v32 = vsel %vm142_vm10, %v546_v55, %v139_v27 }
  0xb1   :  { %v148_v34 = vsel %vm145_vm11, %v147_v25, %v143_v32  ;;  %v199_v36 = vadd.f32 1e-05, %v195_v31  ;;  %v154_v39 = vadd.f32 %v548_v9, %v153_v35  ;;  %v550_v11 = vpop.eup %549 }
  0xb2   :  { %v762_v37 = vmul.f32 %v148_v34, %v742_v19  ;;  %v181_v42 = vmul.f32 %v148_v34, %v738_v17  ;;  %v201_v44 = vmul.f32 %v550_v11, %v196_v61  ;;  %vm207_vm0 = vweird.f32 %v550_v11 }
  0xb3   :  { %551 = vrsqrt.f32 %v199_v36  ;;  %v158_v41 = vsel %vm157_vm14, %v548_v9, %v154_v39  ;;  %v254_v58 = vpop.permute.xlu1 %253  ;;  %vm208_vm2 = vmor %vm206_vm1, %vm207_vm0  ;;  %vm236_vm4 = vweird.f32 %v199_v36 }
  0xb4   :  { %v185_v43 = vmul.f32 %v762_v37, %v762_v37  ;;  %538 = vset.pattern.permute.xlu2 %v557_v45  ;;  %v163_v47 = vsel %vm160_vm15, %v162_v40, %v158_v41  ;;  %v202_v49 = vmul.f32 %v550_v11, %v201_v44 }
  0xb5   :  { %v769_v19 = vmul.f32 %v163_v47, %v740_v18  ;;  %v182_v17 = vmul.f32 %v163_v47, %v746_v26  ;;  %v273_v18 = vpop.permute.xlu0 %272 }
  0xb6   :  { %v189_v48 = vsub.f32 %v181_v42, %v185_v43  ;;  %v203_v51 = vmul.f32 0.5, %v202_v49  ;;  %v260_v40 = vpop.permute.xlu2 %259 }
  0xb7   :  { %v186_v52 = vmul.f32 %v769_v19, %v769_v19 }
  0xb8   :  { %v193_v50 = vmax.f32 %v189_v48, 0.0  ;;  %v204_v55 = vsub.f32 1.5, %v203_v51 }
  0xb9   :  { %v552_v53 = vpop.eup %551  ;;  %v190_v45 = vsub.f32 %v182_v17, %v186_v52 }
  0xba   :  { %v197_v54 = vadd.f32 1e-05, %v193_v50  ;;  %v231_v56 = vmul.f32 %v552_v53, %v199_v36  ;;  %v205_v60 = vmul.f32 %v550_v11, %v204_v55  ;;  %vm237_vm3 = vweird.f32 %v552_v53 }
  0xbb   :  { %v194_v63 = vmax.f32 %v190_v45, 0.0  ;;  %vm238_vm5 = vmor %vm236_vm4, %vm237_vm3 }
  0xbc   :  { %553 = vrsqrt.f32 %v197_v54  ;;  %v232_v62 = vmul.f32 %v552_v53, %v231_v56  ;;  %v209_v4 = vsel %vm208_vm2, %v550_v11, %v205_v60  ;;  %vm216_vm7 = vweird.f32 %v197_v54 }
  0xbd   :  { %v304_v10 = vmul.f32 %v273_v18, %v209_v4  ;;  %v300_v13 = vmul.f32 %v248_v57, %v209_v4  ;;  %v198_v14 = vadd.f32 1e-05, %v194_v63 }
  0xbe   :  { %v233_v9 = vmul.f32 0.5, %v232_v62 }
  0xbf   :  { %406 = vperm.xlu2 %538, %v304_v10   ;;  %386 = vperm.xlu1 %537, %v300_v13   ;;  %555 = vrsqrt.f32 %v198_v14  ;;  %vm226_vm10 = vweird.f32 %v198_v14  ;;  %v308_v17 = vmul.f32 %v300_v13, %v751_v46  ;;  %v312_v63 = vmul.f32 %v304_v10, %v751_v46 }
  0xc0   :  { %v234_v26 = vsub.f32 1.5, %v233_v9 }
  0xc2   :  { %v554_v20 = vpop.eup %553  ;;  %v235_v25 = vmul.f32 %v552_v53, %v234_v26 }
  0xc3   :  { %v211_v21 = vmul.f32 %v554_v20, %v197_v54  ;;  %v266_v27 = vpop.permute.xlu1 %265  ;;  %vm217_vm6 = vweird.f32 %v554_v20 }
  0xc4   :  { %v239_v61 = vsel %vm238_vm5, %v552_v53, %v235_v25  ;;  %vm218_vm8 = vmor %vm216_vm7, %vm217_vm6 }
  0xc5   :  { %v212_v28 = vmul.f32 %v554_v20, %v211_v21  ;;  %v303_v29 = vmul.f32 %v266_v27, %v239_v61  ;;  %v556_v30 = vpop.eup %555 }
  0xc6   :  { %v221_v32 = vmul.f32 %v556_v30, %v198_v14  ;;  %vm227_vm9 = vweird.f32 %v556_v30  ;;  %v279_v50 = vpop.permute.xlu2 %278 }
  0xc7   :  { %v213_v31 = vmul.f32 0.5, %v212_v28  ;;  %401 = vperm.xlu0 %539, %v303_v29   ;;  %vm228_vm11 = vmor %vm226_vm10, %vm227_vm9  ;;  %v311_v18 = vmul.f32 %v303_v29, %v756_v59 }
  0xc8   :  { %v222_v34 = vmul.f32 %v556_v30, %v221_v32 }
  0xc9   :  { %v214_v35 = vsub.f32 1.5, %v213_v31 }
  0xca   :  { %v223_v11 = vmul.f32 0.5, %v222_v34 }
  0xcb   :  { %v215_v39 = vmul.f32 %v554_v20, %v214_v35 }
  0xcc   :  { %v224_v42 = vsub.f32 1.5, %v223_v11 }
  0xcd   :  { %v219_v41 = vsel %vm218_vm8, %v554_v20, %v215_v39 }
  0xce   :  { %v301_v36 = vmul.f32 %v254_v58, %v219_v41  ;;  %v225_v43 = vmul.f32 %v556_v30, %v224_v42  ;;  %v305_v51 = vmul.f32 %v279_v50, %v219_v41  ;;  %v330_v58 = vpop.permute.xlu0 %329 }
  0xd0   :  { %391 = vperm.xlu2 %538, %v301_v36   ;;  %v229_v44 = vsel %vm228_vm11, %v556_v30, %v225_v43  ;;  %v309_v26 = vmul.f32 %v301_v36, %v762_v37  ;;  %v313_v21 = vmul.f32 %v305_v51, %v762_v37 }
  0xd1   :  { %v302_v47 = vmul.f32 %v260_v40, %v229_v44 }
  0xd2   :  { %v377_v25 = vsub.f32 %v309_v26, %v330_v58 }
  0xd3   :  { %v285_v48 = vpop.permute.xlu1 %284  ;;  %396 = vperm.xlu1 %537, %v302_v47   ;;  %v310_v57 = vmul.f32 %v302_v47, %v769_v19 }
  0xd4   :  { %v306_v49 = vmul.f32 %v285_v48, %v229_v44 }
  0xd6   :  { %v291_v52 = vpop.permute.xlu2 %290  ;;  %v314_v13 = vmul.f32 %v306_v49, %v769_v19  ;;  %v361_v14 = vpop.permute.xlu0 %360 }
  0xd7   :  { %v307_v53 = vmul.f32 %v291_v52, %v239_v61 }
  0xd8   :  { %416 = vperm.xlu2 %538, %v306_v49   ;;  %v382_v20 = vsub.f32 %v314_v13, %v361_v14 }
  0xd9   :  { %v315_v28 = vmul.f32 %v307_v53, %v756_v59 }
  0xdb   :  { %411 = vperm.xlu1 %537, %v305_v51  }
  0xe3   :  { %v324_v54 = vpop.permute.xlu1 %323  ;;  %421 = vperm.xlu1 %537, %v307_v53  }
  0xe4   :  { %v376_v55 = vsub.f32 %v308_v17, %v324_v54 }
  0xe6   :  { %442 = vperm.xlu0 %539, %v376_v55   ;;  %v336_v56 = vpop.permute.xlu2 %335 }
  0xe7   :  { %v378_v45 = vsub.f32 %v310_v57, %v336_v56 }
  0xeb   :  { %452 = vperm.xlu1 %537, %v378_v45  }
  0xf3   :  { %v342_v60 = vpop.permute.xlu1 %341 }
  0xf4   :  { %v379_v62 = vsub.f32 %v311_v18, %v342_v60 }
  0xf6   :  { %v349_v4 = vpop.permute.xlu2 %348  ;;  %457 = vperm.xlu0 %539, %v379_v62  }
  0xf7   :  { %v380_v9 = vsub.f32 %v312_v63, %v349_v4 }
  0xf9   :  { %462 = vperm.xlu2 %538, %v380_v9  }
  0xfe   :  { %472 = vperm.xlu0 %539, %v382_v20  }
 0x101   :  { %447 = vperm.xlu2 %538, %v377_v25  }
 0x103   :  { %v355_v27 = vpop.permute.xlu1 %354 }
 0x104   :  { %v381_v61 = vsub.f32 %v313_v21, %v355_v27 }
 0x106   :  { %v367_v46 = vpop.permute.xlu2 %366  ;;  %467 = vperm.xlu1 %537, %v381_v61  }
 0x107   :  { %v383_v10 = vsub.f32 %v315_v28, %v367_v46 }
 0x109   :  { %477 = vperm.xlu2 %538, %v383_v10  }
 0x119   :  { %v407_v29 = vpop.permute.xlu2 %406 }
 0x11a   :  { %v432_v39 = vmul.f32 %v407_v29, %v618_v7  ;;  %v433_v11 = vmul.f32 %v407_v29, %v623_v8 }
 0x12a   :  { %v392_v30 = vpop.permute.xlu2 %391 }
 0x12b   :  { %v426_v7 = vmul.f32 %v392_v30, %v657_v22  ;;  %v427_v8 = vmul.f32 %v392_v30, %v662_v23 }
 0x131   :  { %v387_v19 = vpop.permute.xlu1 %386 }
 0x132   :  { %v417_v32 = vpop.permute.xlu2 %416  ;;  %v424_v36 = vmul.f32 %v387_v19, %v608_v5  ;;  %v425_v42 = vmul.f32 %v387_v19, %v613_v6 }
 0x133   :  { %v436_v57 = vmul.f32 %v417_v32, %v596_v2  ;;  %v437_v45 = vmul.f32 %v417_v32, %v601_v3 }
 0x139   :  { %v402_v34 = vpop.permute.xlu0 %401 }
 0x145   :  { %v397_v31 = vpop.permute.xlu1 %396 }
 0x146   :  { %v428_v5 = vmul.f32 %v397_v31, %v586_v0  ;;  %v429_v6 = vmul.f32 %v397_v31, %v591_v1 }
 0x14d   :  { %v412_v35 = vpop.permute.xlu1 %411 }
 0x14e   :  { %v435_v60 = vmul.f32 %v412_v35, %v683_v33 }
 0x153   :  { %v463_v37 = vpop.permute.xlu2 %462 }
 0x154   :  { %v488_v40 = vsub.f32 %v432_v39, %v463_v37  ;;  %v489_v41 = vsub.f32 %v433_v11, %v463_v37 }
 0x155   :  { %v422_v59 = vpop.permute.xlu1 %421 }
 0x156   :  { %504 = vst [vmem:[%s850_s4 + $0x40] sm:$0xff] %v488_v40  ;;  %v438_v52 = vmul.f32 %v422_v59, %v647_v16  ;;  %v439_v53 = vmul.f32 %v422_v59, %v692_v38  ;;  %v430_v16 = vmul.f32 %v402_v34, %v634_v12  ;;  %v431_v38 = vmul.f32 %v402_v34, %v642_v15 }
 0x157   :  { %505 = vst [vmem:[%s850_s4 + $0x48] sm:$0xff] %v489_v41  ;;  %v434_v15 = vmul.f32 %v412_v35, %v667_v24 }
 0x158   :  { %v443_v43 = vpop.permute.xlu0 %442 }
 0x159   :  { %v480_v44 = vsub.f32 %v424_v36, %v443_v43  ;;  %v481_v47 = vsub.f32 %v425_v42, %v443_v43 }
 0x15b   :  { %v448_v48 = vpop.permute.xlu2 %447  ;;  %496 = vst [vmem:[%s850_s4] sm:$0xff] %v480_v44 }
 0x15c   :  { %v482_v49 = vsub.f32 %v426_v7, %v448_v48  ;;  %v483_v50 = vsub.f32 %v427_v8, %v448_v48  ;;  %497 = vst [vmem:[%s850_s4 + $0x8] sm:$0xff] %v481_v47 }
 0x15d   :  { %v453_v22 = vpop.permute.xlu1 %452 }
 0x15e   :  { %498 = vst [vmem:[%s850_s4 + $0x10] sm:$0xff] %v482_v49  ;;  %v484_v23 = vsub.f32 %v428_v5, %v453_v22  ;;  %v485_v51 = vsub.f32 %v429_v6, %v453_v22 }
 0x15f   :  { %499 = vst [vmem:[%s850_s4 + $0x18] sm:$0xff] %v483_v50 }
 0x160   :  { %500 = vst [vmem:[%s850_s4 + $0x20] sm:$0xff] %v484_v23 }
 0x161   :  { %501 = vst [vmem:[%s850_s4 + $0x28] sm:$0xff] %v485_v51 }
 0x163   :  { %v478_v0 = vpop.permute.xlu2 %477 }
 0x164   :  { %v494_v1 = vsub.f32 %v438_v52, %v478_v0  ;;  %v495_v17 = vsub.f32 %v439_v53, %v478_v0 }
 0x166   :  { %510 = vst [vmem:[%s850_s4 + $0x70] sm:$0xff] %v494_v1 }
 0x167   :  { %511 = vst [vmem:[%s850_s4 + $0x78] sm:$0xff] %v495_v17 }
 0x168   :  { %v458_v54 = vpop.permute.xlu0 %457 }
 0x169   :  { %v486_v55 = vsub.f32 %v430_v16, %v458_v54  ;;  %v487_v56 = vsub.f32 %v431_v38, %v458_v54 }
 0x16b   :  { %502 = vst [vmem:[%s850_s4 + $0x30] sm:$0xff] %v486_v55 }
 0x16c   :  { %503 = vst [vmem:[%s850_s4 + $0x38] sm:$0xff] %v487_v56 }
 0x170   :  { %v473_v58 = vpop.permute.xlu0 %472 }
 0x171   :  { %v492_v18 = vsub.f32 %v436_v57, %v473_v58  ;;  %v493_v12 = vsub.f32 %v437_v45, %v473_v58 }
 0x173   :  { %508 = vst [vmem:[%s850_s4 + $0x60] sm:$0xff] %v492_v18 }
 0x174   :  { %509 = vst [vmem:[%s850_s4 + $0x68] sm:$0xff] %v493_v12 }
 0x178   :  { %v468_v62 = vpop.permute.xlu1 %467 }
 0x179   :  { %v490_v63 = vsub.f32 %v434_v15, %v468_v62  ;;  %v491_v2 = vsub.f32 %v435_v60, %v468_v62 }
 0x17b   :  { %506 = vst [vmem:[%s850_s4 + $0x50] sm:$0xff] %v490_v63 }
 0x17c   :  { %507 = vst [vmem:[%s850_s4 + $0x58] sm:$0xff] %v491_v2 }

</bundles_post_ra>
